<compile_context>
chip_gen: v5e
topology: v5e:2x2
jax: 0.10.0
libtpu: 0.0.40
codegen_flags: <defaults>
</compile_context>

<pallas_src>
import functools

import jax
import jax.numpy as jnp
from jax.experimental import pallas as pl
from jax.experimental.pallas import tpu as pltpu


def _round_up(x, m):
    return ((x + m - 1) // m) * m


def _fused_mlp_kernel(x_ref, w_ref, b_ref, o_ref, *, celu_mask):
    """Entire MLP forward for one batch tile, fully inside VMEM.

    x_ref: (TILE_B, D_pad)     zero-padded activations (lane-dense)
    w_ref: (L, D_pad, D_pad)   stacked zero-padded (in, out) weights (resident)
    b_ref: (L, 1, D_pad)       stacked zero-padded biases (resident)
    o_ref: (TILE_B, D_pad)     lane-dense output; valid cols sliced outside
    """
    h = x_ref[...]
    # Static (unrolled) layer loop: L <= 4, each step is one MXU matmul plus
    # VPU/EUP epilogue; the activation never leaves vregs/VMEM between layers.
    for l, apply_celu in enumerate(celu_mask):
        y = jnp.dot(h, w_ref[l], preferred_element_type=jnp.float32)
        y = y + b_ref[l]  # (1, D_pad) broadcast over batch
        if apply_celu:
            # CELU(alpha=1): max(0,x) + min(0, expm1(x)).  expm1(0)=0, so the
            # zero-padded lanes/rows stay exactly zero through every layer.
            y = jnp.where(y > 0, y, jnp.expm1(y))
        h = y
    o_ref[...] = h.astype(o_ref.dtype)


@functools.partial(
    jax.jit, static_argnames=("celu_mask", "n_out", "tile_b_max"))
def fused_mlp_pallas(x, w_stack, b_stack, *, celu_mask, n_out,
                     tile_b_max=1024):
    """Run the whole padded MLP in one pallas_call and slice the valid output.

    x:       (B, D)            float32 unpadded activations
    w_stack: (L, D_pad, D_pad) float32 zero-padded (in, out) weights
    b_stack: (L, 1, D_pad)     float32 zero-padded biases
    """
    B, D = x.shape
    L, D_pad, _ = w_stack.shape

    # Pad batch to the f32 sublane quantum (8); tile it if it gets large so
    # activation tiles stream while the weight stack stays VMEM resident.
    B_pad = max(8, _round_up(B, 8))
    if B_pad > tile_b_max:
        B_pad = _round_up(B_pad, tile_b_max)
        tile_b = tile_b_max
    else:
        tile_b = B_pad

    x_pad = jnp.zeros((B_pad, D_pad), x.dtype).at[:B, :D].set(x)

    kernel = functools.partial(_fused_mlp_kernel, celu_mask=tuple(celu_mask))
    out = pl.pallas_call(
        kernel,
        out_shape=jax.ShapeDtypeStruct((B_pad, D_pad), x.dtype),
        grid=(B_pad // tile_b,),
        in_specs=[
            pl.BlockSpec((tile_b, D_pad), lambda i: (i, 0)),
            pl.BlockSpec((L, D_pad, D_pad), lambda i: (0, 0, 0)),  # resident
            pl.BlockSpec((L, 1, D_pad), lambda i: (0, 0, 0)),      # resident
        ],
        out_specs=pl.BlockSpec((tile_b, D_pad), lambda i: (i, 0)),
        compiler_params=pltpu.CompilerParams(
            dimension_semantics=("parallel",)),
    )(x_pad, w_stack, b_stack)
    return out[:B, :n_out]


class Perceptron:
    """JAX/Pallas port of the PyTorch Perceptron module (fused forward)."""

    def __init__(self, input_length, key, mode="single"):
        input_length *= 7
        self.mode = mode
        self.n_out = 2

        def init_linear(k, fan_in, fan_out):
            # Deterministic init mirroring nn.Linear's kaiming-uniform bounds.
            kw, kb = jax.random.split(k)
            bound = 1.0 / jnp.sqrt(fan_in)
            w = jax.random.uniform(
                kw, (fan_in, fan_out), jnp.float32, -bound, bound)
            b = jax.random.uniform(
                kb, (fan_out,), jnp.float32, -bound, bound)
            return w, b

        if mode == "chain":
            keys = jax.random.split(key, 4)
            layers = [init_linear(keys[i], input_length, input_length)
                      for i in range(3)]
            layers.append(init_linear(keys[3], input_length, 2))
            # nn.Sequential applies actFunction after EVERY Linear, including
            # the final Linear(n, 2).
            self.celu_mask = (True, True, True, True)
        else:
            layers = [init_linear(key, input_length, 2)]
            self.celu_mask = (False,)
        self.layers = layers  # unpadded (in,out) weights, for the reference

        # Pre-pad ONCE to MXU/vreg friendly shapes: every layer is embedded in
        # a (L, D_pad, D_pad) stack so the fused kernel sees a single aligned,
        # VMEM-resident block.  Zero padding keeps the math exact.
        d_pad = max(128, _round_up(input_length, 128))
        L = len(layers)
        w_stack = jnp.zeros((L, d_pad, d_pad), jnp.float32)
        b_stack = jnp.zeros((L, 1, d_pad), jnp.float32)
        for l, (w, b) in enumerate(layers):
            w_stack = w_stack.at[l, :w.shape[0], :w.shape[1]].set(w)
            b_stack = b_stack.at[l, 0, :b.shape[0]].set(b)
        self.w_stack = w_stack
        self.b_stack = b_stack

    def __call__(self, x):
        return fused_mlp_pallas(
            x, self.w_stack, self.b_stack,
            celu_mask=self.celu_mask, n_out=self.n_out)


def _reference_forward(model, x):
    # Pure-JAX reference (unpadded weights) for correctness checking.
    for (w, b), act in zip(model.layers, model.celu_mask):
        x = x @ w + b
        if act:
            x = jnp.where(x > 0, x, jnp.expm1(x))
    return x


if __name__ == "__main__":
    key = jax.random.PRNGKey(0)
    k_x, k_single, k_chain = jax.random.split(key, 3)

    input_length = 8          # module multiplies by 7 -> 56 features
    batch = 4
    x = jax.random.normal(k_x, (batch, input_length * 7), jnp.float32)

    # Default ('single') mode: one Linear(56, 2), fused kernel with L=1.
    model_single = Perceptron(input_length, k_single, mode="single")
    out_single = jax.block_until_ready(model_single(x))
    ref_single = _reference_forward(model_single, x)
    assert out_single.shape == (batch, 2)
    assert jnp.allclose(out_single, ref_single, atol=1e-5, rtol=1e-5)

    # 'chain' mode: 4 Linear+CELU layers fused into ONE pallas_call.
    model_chain = Perceptron(input_length, k_chain, mode="chain")
    out_chain = jax.block_until_ready(model_chain(x))
    ref_chain = _reference_forward(model_chain, x)
    assert out_chain.shape == (batch, 2)
    assert jnp.allclose(out_chain, ref_chain, atol=1e-5, rtol=1e-5)

    print("KERNEL_OK")
</pallas_src>

<mosaic_0001>
module attributes {stable_mosaic.version = 11 : i64} {
  func.func @_fused_mlp_kernel(%arg0: i32, %arg1: memref<8x128xf32, #tpu.memory_space<vmem>>, %arg2: memref<1x128x128xf32, #tpu.memory_space<vmem>>, %arg3: memref<1x1x128xf32, #tpu.memory_space<vmem>>, %arg4: memref<8x128xf32, #tpu.memory_space<vmem>>) attributes {dimension_semantics = [#tpu.dimension_semantics<parallel>], iteration_bounds = array<i64: 1>, scalar_prefetch = 0 : i64, scratch_operands = 0 : i64, tpu.core_type = #tpu.core_type<tc>, window_params = [{transform_indices = @transform_0, window_bounds = array<i64: 8, 128>}, {pipeline_mode = #tpu.pipeline_mode<synchronous>, transform_indices = @transform_1, window_bounds = array<i64: 1, 128, 128>}, {pipeline_mode = #tpu.pipeline_mode<synchronous>, transform_indices = @transform_2, window_bounds = array<i64: 1, 1, 128>}, {transform_indices = @transform_3, window_bounds = array<i64: 8, 128>}]} {
    %c0 = arith.constant 0 : index
    %c0_0 = arith.constant 0 : index
    %0 = vector.load %arg1[%c0, %c0_0] : memref<8x128xf32, #tpu.memory_space<vmem>>, vector<8x128xf32>
    %c0_1 = arith.constant 0 : index
    %c0_2 = arith.constant 0 : index
    %c0_3 = arith.constant 0 : index
    %1 = vector.load %arg2[%c0_1, %c0_2, %c0_3] : memref<1x128x128xf32, #tpu.memory_space<vmem>>, vector<1x128x128xf32>
    %2 = vector.shape_cast %1 : vector<1x128x128xf32> to vector<128x128xf32>
    %cst = arith.constant dense<0.000000e+00> : vector<8x128xf32>
    %3 = tpu.matmul %0, %2, %cst {dimension_numbers = #tpu.dot_dimension_numbers<[1], [0], [0], [1], [0, 0, 1, 1], [], []>} : vector<8x128xf32>, vector<128x128xf32>, vector<8x128xf32> -> vector<8x128xf32>
    %c0_4 = arith.constant 0 : index
    %c0_5 = arith.constant 0 : index
    %c0_6 = arith.constant 0 : index
    %4 = vector.load %arg3[%c0_4, %c0_5, %c0_6] : memref<1x1x128xf32, #tpu.memory_space<vmem>>, vector<1x1x128xf32>
    %5 = vector.shape_cast %4 : vector<1x1x128xf32> to vector<1x128xf32>
    %6 = vector.broadcast %5 : vector<1x128xf32> to vector<8x128xf32>
    %7 = arith.addf %3, %6 : vector<8x128xf32>
    %c0_7 = arith.constant 0 : index
    %c0_8 = arith.constant 0 : index
    %8 = vector.load %arg4[%c0_7, %c0_8] : memref<8x128xf32, #tpu.memory_space<vmem>>, vector<8x128xf32>
    tpu.vector_store %arg4[%c0_7, %c0_8], %7 {strides = array<i32>} : memref<8x128xf32, #tpu.memory_space<vmem>>, vector<8x128xf32>,
    return
  }
  func.func @transform_0(%arg0: i32) -> (i32, i32) {
    %c0_i32 = arith.constant 0 : i32
    %c0_i32_0 = arith.constant 0 : i32
    return %arg0, %c0_i32 : i32, i32
  }
  func.func @transform_1(%arg0: i32) -> (i32, i32, i32) {
    %c0_i32 = arith.constant 0 : i32
    %c0_i32_0 = arith.constant 0 : i32
    %c0_i32_1 = arith.constant 0 : i32
    %c0_i32_2 = arith.constant 0 : i32
    return %c0_i32, %c0_i32_0, %c0_i32_1 : i32, i32, i32
  }
  func.func @transform_2(%arg0: i32) -> (i32, i32, i32) {
    %c0_i32 = arith.constant 0 : i32
    %c0_i32_0 = arith.constant 0 : i32
    %c0_i32_1 = arith.constant 0 : i32
    %c0_i32_2 = arith.constant 0 : i32
    return %c0_i32, %c0_i32_0, %c0_i32_1 : i32, i32, i32
  }
  func.func @transform_3(%arg0: i32) -> (i32, i32) {
    %c0_i32 = arith.constant 0 : i32
    %c0_i32_0 = arith.constant 0 : i32
    return %arg0, %c0_i32 : i32, i32
  }
}

</mosaic_0001>

<bundles_post_ra>
// kernel: fused_mlp_pallas.1
= control target key start
LH: loop header
LB: loop body
LE: loop exit
PB: predicated region body
PF: predicated region fallthrough
CT: control target
= control target key end

     0   :  { %8 = vsyncpa [#allocation3], 0  ;;  %s107_s15 = smov [#allocation2]   ;;  %s108_s17 = smov 128   ;;  %s142_s0 = inlined_call_operand.vmem [shape: f32[8,128], index: 0, kind: input, shape index: {}]   ;;  %s143_s1 = inlined_call_operand.hbm [shape: f32[1,128,128], index: 1, kind: input, shape index: {}]   ;;  %s144_s2 = inlined_call_operand.vmem [shape: f32[1,1,128], index: 2, kind: input, shape index: {}]   ;;  %s145_s3 = inlined_call_operand.vmem [shape: f32[8,128], index: 3, kind: output, shape index: {}]  }
   0x1   :  { %s15_s14 = sshll.u32 %s143_s1, 4  ;;  %s17_s16 = sshll.u32 %s107_s15, 4  ;;  %s16_s14 = int_to_ptr.hbm [resolvable:$true] %s15_s14  ;;  %s18_s16 = int_to_ptr.vmem [resolvable:$true] %s17_s16 }
   0x2   :  { %s109_s18 = smov 8  }
   0x3   :  { %23 = dma.hbm_to_vmem [thread:$0]  %s16_s14, 2048, %s18_s16, [#allocation3], %s108_s17, %s108_s17, %s109_s18  }
   0x4   :  { %105 = dma.done.wait [#allocation3], 2048  }
   0x5   :  { %106 = vsyncadd [#allocation3], 4294965248  ;;  %v46_v0 = vld [vmem:[#allocation2 + $0x78] sm:$0xff]  ;;  %v45_v1 = vld [vmem:[#allocation2 + $0x70] sm:$0xff] }
   0x6   :  { %51 = vmatpush.msra.mxu0 %v46_v0  ;;  %v44_v2 = vld [vmem:[#allocation2 + $0x68] sm:$0xff]  ;;  %v43_v3 = vld [vmem:[#allocation2 + $0x60] sm:$0xff]  ;;  %v42_v4 = vld [vmem:[#allocation2 + $0x58] sm:$0xff] }
   0x7   :  { %v41_v5 = vld [vmem:[#allocation2 + $0x50] sm:$0xff]  ;;  %v40_v6 = vld [vmem:[#allocation2 + $0x48] sm:$0xff]  ;;  %v39_v7 = vld [vmem:[#allocation2 + $0x40] sm:$0xff] }
   0x8   :  { %52 = vmatpush.msra.mxu0 %v45_v1  ;;  %v38_v8 = vld [vmem:[#allocation2 + $0x38] sm:$0xff]  ;;  %v37_v9 = vld [vmem:[#allocation2 + $0x30] sm:$0xff]  ;;  %v36_v10 = vld [vmem:[#allocation2 + $0x28] sm:$0xff] }
   0x9   :  { %v35_v11 = vld [vmem:[#allocation2 + $0x20] sm:$0xff]  ;;  %v34_v12 = vld [vmem:[#allocation2 + $0x18] sm:$0xff]  ;;  %v33_v13 = vld [vmem:[#allocation2 + $0x10] sm:$0xff] }
   0xa   :  { %53 = vmatpush.msra.mxu0 %v44_v2  ;;  %v32_v14 = vld [vmem:[#allocation2 + $0x8] sm:$0xff]  ;;  %v31_v15 = vld [vmem:[#allocation2] sm:$0xff] }
   0xb   :  { %v30_v16 = vld [vmem:[%s142_s0] sm:$0xff] }
   0xc   :  { %54 = vmatpush.msra.mxu0 %v43_v3  ;;  %v80_v17 = vld [vmem:[%s144_s2] ss:$0 sm:$0xff] }
   0xe   :  { %55 = vmatpush.msra.mxu0 %v42_v4 }
  0x10   :  { %56 = vmatpush.msra.mxu0 %v41_v5 }
  0x12   :  { %57 = vmatpush.msra.mxu0 %v40_v6 }
  0x14   :  { %58 = vmatpush.msra.mxu0 %v39_v7 }
  0x16   :  { %59 = vmatpush.msra.mxu0 %v38_v8 }
  0x18   :  { %60 = vmatpush.msra.mxu0 %v37_v9 }
  0x1a   :  { %61 = vmatpush.msra.mxu0 %v36_v10 }
  0x1c   :  { %62 = vmatpush.msra.mxu0 %v35_v11 }
  0x1e   :  { %63 = vmatpush.msra.mxu0 %v34_v12 }
  0x20   :  { %64 = vmatpush.msra.mxu0 %v33_v13 }
  0x22   :  { %65 = vmatpush.msra.mxu0 %v32_v14 }
  0x24   :  { %66 = vmatpush.msra.mxu0 %v31_v15 }
  0x25   :  { %67 = vmatmul.f32.vlgmr.msra.gmra.mxu0 %v30_v16 }
  0xa2   :  { %v68_v18 = vpop.f32.mrf.mxu0 }
  0xa3   :  { %v69_v19 = vadd.f32 %v80_v17, %v68_v18 }
  0xa5   :  { %71 = vst [vmem:[%s145_s3] sm:$0xff] %v69_v19 }
  0xa6   :  { %76 = vsyncpa [#allocation3], 1 }

</bundles_post_ra>
